<compile_context>
chip_gen: v7x
topology: tpu7x:2x2x1
jax: 0.10.0
libtpu: 0.0.40
codegen_flags: <defaults>
</compile_context>

<pallas_src>
import numpy as np

import jax
import jax.numpy as jnp
from jax.experimental import pallas as pl
from jax.experimental.pallas import tpu as pltpu

LAYERS = [2, 10, 10, 10, 10, 10, 10, 10, 10, 1]
NUM_LIN = len(LAYERS) - 1          # 9 linear layers
FEAT_PAD = 16                      # padded feature width (sublane axis)
TM_MAX = 1024                      # row-tile cap (lane axis); sweep to 2048


def _round_up(v, m):
    return ((v + m - 1) // m) * m


def _pick_tile(n, tm_max=TM_MAX, num_cores=1):
    """Largest lane-aligned row tile covering ceil(n / num_cores).

    v5e/v6e have a single TensorCore: num_cores=1 -> never split the batch
    just to manufacture >= 2 grid steps (each step costs ~0.35us fixed
    overhead).  On v7x (2 TCs/chip) pass num_cores=2 so
    dimension_semantics=("parallel",) can balance the cores."""
    per_core = -(-n // num_cores)
    return max(128, min(tm_max, _round_up(per_core, 128)))


def _mlp_kernel(x_ref, w_ref, b_ref, o_ref):
    """Whole 9-layer MLP for one tile of rows (transposed activation layout).

    x_ref : (2, TM)        raw (x, t) inputs, features on sublanes
    w_ref : (9, 16, 16)    torch-oriented (out, in) weights, zero padded
    b_ref : (9, 16, 1)     biases, zero padded
    o_ref : (1, TM)        lane-dense scalar output per row
    """
    x = x_ref[...]                                        # (2, TM) f32
    # Layer 1 (2 -> 10, padded to 16 sublanes) as two broadcast FMAs on the
    # VPU: avoids feature-padding x in HBM and a degenerate K=2 MXU pass.
    w0 = w_ref[0]                                         # (16, 16)
    h = jnp.tanh(w0[:, 0:1] * x[0:1, :]
                 + w0[:, 1:2] * x[1:2, :]
                 + b_ref[0])                              # (16, TM)
    # Hidden layers 2..8 (tiny MXU matmul + fused bias/tanh) and final
    # linear layer 9 (no tanh).  h_out = W @ h_in + b in (16, TM) layout.
    for i in range(1, NUM_LIN):                           # static unroll
        h = jnp.dot(w_ref[i], h, preferred_element_type=jnp.float32) + b_ref[i]
        if i < NUM_LIN - 1:
            h = jnp.tanh(h)
    # Only sublane row 0 carries the real (width-1) output; store lane-dense.
    o_ref[...] = h[0:1, :]


def pack_params(weights, biases):
    """One-time (host-side) packing of per-layer params into padded stacks.

    weights[i]: (in_i, out_i) == torch W_i.T ; biases[i]: (out_i,).
    Packed in torch (out, in) orientation for the transposed-activation
    kernel.  Zero padding is exactly preserved through Linear+Tanh
    (0-weight rows/cols, 0 bias, tanh(0)=0), so padded math == unpadded MLP.
    """
    w_stack = np.zeros((NUM_LIN, FEAT_PAD, FEAT_PAD), np.float32)
    b_stack = np.zeros((NUM_LIN, FEAT_PAD, 1), np.float32)
    for i, (w, b) in enumerate(zip(weights, biases)):
        din, dout = w.shape
        w_stack[i, :dout, :din] = np.asarray(w).T         # (out, in)
        b_stack[i, :dout, 0] = np.asarray(b)
    return jnp.asarray(w_stack), jnp.asarray(b_stack)
    # NOTE: bf16 weight packing (MXU-native) is possible but skipped: after
    # the K=16 repacking it is a minor win and PINN PDE residuals are
    # precision-sensitive.


def pinn_forward(x, w_stack, b_stack, *, tm=None, num_cores=1):
    """x: (N, 2) f32, packed param stacks from pack_params().  Returns (N, 1)."""
    n, f_in = x.shape
    assert f_in == LAYERS[0]
    if tm is None:
        tm = _pick_tile(n, num_cores=num_cores)
    n_pad = _round_up(n, tm)

    # Features-on-sublanes, rows-on-lanes input slab (2, n_pad).
    x_t = x.T
    if n_pad != n:
        # Padded columns compute garbage (bias path) and are sliced off below.
        x_t = jnp.pad(x_t, ((0, 0), (0, n_pad - n)))

    out = pl.pallas_call(
        _mlp_kernel,
        out_shape=jax.ShapeDtypeStruct((1, n_pad), jnp.float32),
        grid_spec=pltpu.PrefetchScalarGridSpec(
            num_scalar_prefetch=0,
            grid=(n_pad // tm,),
            in_specs=[
                # (2, tm): second-to-last block dim equals the full array dim
                # and tm is a multiple of 128 -> legal, lane-dense DMA.
                pl.BlockSpec((LAYERS[0], tm), lambda i: (0, i)),
                # Constant index_map -> DMA'd once, resident across the grid
                # (per core on v7x; ~10 KB each, so duplication is free).
                pl.BlockSpec((NUM_LIN, FEAT_PAD, FEAT_PAD), lambda i: (0, 0, 0)),
                pl.BlockSpec((NUM_LIN, FEAT_PAD, 1), lambda i: (0, 0, 0)),
            ],
            # Lane-dense (1, tm) output block -> unmasked stores, dense DMA.
            out_specs=pl.BlockSpec((1, tm), lambda i: (0, i)),
        ),
        compiler_params=pltpu.CompilerParams(
            dimension_semantics=("parallel",)),
    )(x_t, w_stack, b_stack)

    return out[0, :n].reshape(n, 1)


def init_params(key):
    """Deterministic init mimicking nn.Linear default: U(-1/sqrt(fan_in), +)."""
    weights, biases = [], []
    for i in range(NUM_LIN):
        din, dout = LAYERS[i], LAYERS[i + 1]
        key, kw, kb = jax.random.split(key, 3)
        bound = 1.0 / jnp.sqrt(jnp.float32(din))
        # stored transposed: (in, out), i.e. torch_weight.T
        weights.append(jax.random.uniform(kw, (din, dout), jnp.float32,
                                          -bound, bound))
        biases.append(jax.random.uniform(kb, (dout,), jnp.float32,
                                         -bound, bound))
    return weights, biases


def reference_forward(x, weights, biases):
    h = x
    for i, (w, b) in enumerate(zip(weights, biases)):
        h = h @ w + b
        if i < NUM_LIN - 1:
            h = jnp.tanh(h)
    return h


if __name__ == "__main__":
    key = jax.random.PRNGKey(0)
    key, kx = jax.random.split(key)

    # small (x, t) collocation points, shape (N, 2) like the Burgers PINN input
    N = 256
    x = jax.random.uniform(kx, (N, 2), jnp.float32, -1.0, 1.0)

    weights, biases = init_params(key)
    w_stack, b_stack = pack_params(weights, biases)   # one-time packing (hoisted)

    y = pinn_forward(x, w_stack, b_stack)             # num_cores=2 on v7x
    y = jax.block_until_ready(y)

    y_ref = reference_forward(x, weights, biases)
    assert y.shape == (N, 1)
    assert jnp.allclose(y, y_ref, atol=1e-5, rtol=1e-5)

    print("KERNEL_OK")
</pallas_src>

<mosaic_0001>
module attributes {stable_mosaic.version = 11 : i64} {
  func.func @_mlp_kernel(%arg0: i32, %arg1: memref<2x256xf32, #tpu.memory_space<vmem>>, %arg2: memref<9x16x16xf32, #tpu.memory_space<vmem>>, %arg3: memref<9x16x1xf32, #tpu.memory_space<vmem>>, %arg4: memref<1x256xf32, #tpu.memory_space<vmem>>) attributes {dimension_semantics = [#tpu.dimension_semantics<parallel>], iteration_bounds = array<i64: 1>, scalar_prefetch = 0 : i64, scratch_operands = 0 : i64, tpu.core_type = #tpu.core_type<tc>, window_params = [{transform_indices = @transform_0, window_bounds = array<i64: 2, 256>}, {pipeline_mode = #tpu.pipeline_mode<synchronous>, transform_indices = @transform_1, window_bounds = array<i64: 9, 16, 16>}, {pipeline_mode = #tpu.pipeline_mode<synchronous>, transform_indices = @transform_2, window_bounds = array<i64: 9, 16, 1>}, {transform_indices = @transform_3, window_bounds = array<i64: 1, 256>}]} {
    %c0 = arith.constant 0 : index
    %c0_0 = arith.constant 0 : index
    %0 = vector.load %arg1[%c0, %c0_0] : memref<2x256xf32, #tpu.memory_space<vmem>>, vector<2x256xf32>
    %c0_1 = arith.constant 0 : index
    %c0_2 = arith.constant 0 : index
    %c0_3 = arith.constant 0 : index
    %1 = vector.load %arg2[%c0_1, %c0_2, %c0_3] : memref<9x16x16xf32, #tpu.memory_space<vmem>>, vector<1x16x16xf32>
    %2 = vector.shape_cast %1 : vector<1x16x16xf32> to vector<16x16xf32>
    %3 = vector.extract_strided_slice %2 {offsets = [0, 0], sizes = [16, 1], strides = [1, 1]} : vector<16x16xf32> to vector<16x1xf32>
    %4 = vector.extract_strided_slice %0 {offsets = [0, 0], sizes = [1, 256], strides = [1, 1]} : vector<2x256xf32> to vector<1x256xf32>
    %5 = vector.broadcast %3 : vector<16x1xf32> to vector<16x256xf32>
    %6 = vector.broadcast %4 : vector<1x256xf32> to vector<16x256xf32>
    %7 = arith.mulf %5, %6 : vector<16x256xf32>
    %8 = vector.extract_strided_slice %2 {offsets = [0, 1], sizes = [16, 1], strides = [1, 1]} : vector<16x16xf32> to vector<16x1xf32>
    %9 = vector.extract_strided_slice %0 {offsets = [1, 0], sizes = [1, 256], strides = [1, 1]} : vector<2x256xf32> to vector<1x256xf32>
    %10 = vector.broadcast %8 : vector<16x1xf32> to vector<16x256xf32>
    %11 = vector.broadcast %9 : vector<1x256xf32> to vector<16x256xf32>
    %12 = arith.mulf %10, %11 : vector<16x256xf32>
    %13 = arith.addf %7, %12 : vector<16x256xf32>
    %c0_4 = arith.constant 0 : index
    %c0_5 = arith.constant 0 : index
    %c0_6 = arith.constant 0 : index
    %14 = vector.load %arg3[%c0_4, %c0_5, %c0_6] : memref<9x16x1xf32, #tpu.memory_space<vmem>>, vector<1x16x1xf32>
    %15 = vector.shape_cast %14 : vector<1x16x1xf32> to vector<16x1xf32>
    %16 = vector.broadcast %15 : vector<16x1xf32> to vector<16x256xf32>
    %17 = arith.addf %13, %16 : vector<16x256xf32>
    %18 = math.tanh %17 : vector<16x256xf32>
    %c1 = arith.constant 1 : index
    %c0_7 = arith.constant 0 : index
    %c0_8 = arith.constant 0 : index
    %19 = vector.load %arg2[%c1, %c0_7, %c0_8] : memref<9x16x16xf32, #tpu.memory_space<vmem>>, vector<1x16x16xf32>
    %20 = vector.shape_cast %19 : vector<1x16x16xf32> to vector<16x16xf32>
    %cst = arith.constant dense<0.000000e+00> : vector<16x256xf32>
    %21 = tpu.matmul %20, %18, %cst {dimension_numbers = #tpu.dot_dimension_numbers<[1], [0], [0], [1], [0, 0, 1, 1], [], []>} : vector<16x16xf32>, vector<16x256xf32>, vector<16x256xf32> -> vector<16x256xf32>
    %c1_9 = arith.constant 1 : index
    %c0_10 = arith.constant 0 : index
    %c0_11 = arith.constant 0 : index
    %22 = vector.load %arg3[%c1_9, %c0_10, %c0_11] : memref<9x16x1xf32, #tpu.memory_space<vmem>>, vector<1x16x1xf32>
    %23 = vector.shape_cast %22 : vector<1x16x1xf32> to vector<16x1xf32>
    %24 = vector.broadcast %23 : vector<16x1xf32> to vector<16x256xf32>
    %25 = arith.addf %21, %24 : vector<16x256xf32>
    %26 = math.tanh %25 : vector<16x256xf32>
    %c2 = arith.constant 2 : index
    %c0_12 = arith.constant 0 : index
    %c0_13 = arith.constant 0 : index
    %27 = vector.load %arg2[%c2, %c0_12, %c0_13] : memref<9x16x16xf32, #tpu.memory_space<vmem>>, vector<1x16x16xf32>
    %28 = vector.shape_cast %27 : vector<1x16x16xf32> to vector<16x16xf32>
    %cst_14 = arith.constant dense<0.000000e+00> : vector<16x256xf32>
    %29 = tpu.matmul %28, %26, %cst_14 {dimension_numbers = #tpu.dot_dimension_numbers<[1], [0], [0], [1], [0, 0, 1, 1], [], []>} : vector<16x16xf32>, vector<16x256xf32>, vector<16x256xf32> -> vector<16x256xf32>
    %c2_15 = arith.constant 2 : index
    %c0_16 = arith.constant 0 : index
    %c0_17 = arith.constant 0 : index
    %30 = vector.load %arg3[%c2_15, %c0_16, %c0_17] : memref<9x16x1xf32, #tpu.memory_space<vmem>>, vector<1x16x1xf32>
    %31 = vector.shape_cast %30 : vector<1x16x1xf32> to vector<16x1xf32>
    %32 = vector.broadcast %31 : vector<16x1xf32> to vector<16x256xf32>
    %33 = arith.addf %29, %32 : vector<16x256xf32>
    %34 = math.tanh %33 : vector<16x256xf32>
    %c3 = arith.constant 3 : index
    %c0_18 = arith.constant 0 : index
    %c0_19 = arith.constant 0 : index
    %35 = vector.load %arg2[%c3, %c0_18, %c0_19] : memref<9x16x16xf32, #tpu.memory_space<vmem>>, vector<1x16x16xf32>
    %36 = vector.shape_cast %35 : vector<1x16x16xf32> to vector<16x16xf32>
    %cst_20 = arith.constant dense<0.000000e+00> : vector<16x256xf32>
    %37 = tpu.matmul %36, %34, %cst_20 {dimension_numbers = #tpu.dot_dimension_numbers<[1], [0], [0], [1], [0, 0, 1, 1], [], []>} : vector<16x16xf32>, vector<16x256xf32>, vector<16x256xf32> -> vector<16x256xf32>
    %c3_21 = arith.constant 3 : index
    %c0_22 = arith.constant 0 : index
    %c0_23 = arith.constant 0 : index
    %38 = vector.load %arg3[%c3_21, %c0_22, %c0_23] : memref<9x16x1xf32, #tpu.memory_space<vmem>>, vector<1x16x1xf32>
    %39 = vector.shape_cast %38 : vector<1x16x1xf32> to vector<16x1xf32>
    %40 = vector.broadcast %39 : vector<16x1xf32> to vector<16x256xf32>
    %41 = arith.addf %37, %40 : vector<16x256xf32>
    %42 = math.tanh %41 : vector<16x256xf32>
    %c4 = arith.constant 4 : index
    %c0_24 = arith.constant 0 : index
    %c0_25 = arith.constant 0 : index
    %43 = vector.load %arg2[%c4, %c0_24, %c0_25] : memref<9x16x16xf32, #tpu.memory_space<vmem>>, vector<1x16x16xf32>
    %44 = vector.shape_cast %43 : vector<1x16x16xf32> to vector<16x16xf32>
    %cst_26 = arith.constant dense<0.000000e+00> : vector<16x256xf32>
    %45 = tpu.matmul %44, %42, %cst_26 {dimension_numbers = #tpu.dot_dimension_numbers<[1], [0], [0], [1], [0, 0, 1, 1], [], []>} : vector<16x16xf32>, vector<16x256xf32>, vector<16x256xf32> -> vector<16x256xf32>
    %c4_27 = arith.constant 4 : index
    %c0_28 = arith.constant 0 : index
    %c0_29 = arith.constant 0 : index
    %46 = vector.load %arg3[%c4_27, %c0_28, %c0_29] : memref<9x16x1xf32, #tpu.memory_space<vmem>>, vector<1x16x1xf32>
    %47 = vector.shape_cast %46 : vector<1x16x1xf32> to vector<16x1xf32>
    %48 = vector.broadcast %47 : vector<16x1xf32> to vector<16x256xf32>
    %49 = arith.addf %45, %48 : vector<16x256xf32>
    %50 = math.tanh %49 : vector<16x256xf32>
    %c5 = arith.constant 5 : index
    %c0_30 = arith.constant 0 : index
    %c0_31 = arith.constant 0 : index
    %51 = vector.load %arg2[%c5, %c0_30, %c0_31] : memref<9x16x16xf32, #tpu.memory_space<vmem>>, vector<1x16x16xf32>
    %52 = vector.shape_cast %51 : vector<1x16x16xf32> to vector<16x16xf32>
    %cst_32 = arith.constant dense<0.000000e+00> : vector<16x256xf32>
    %53 = tpu.matmul %52, %50, %cst_32 {dimension_numbers = #tpu.dot_dimension_numbers<[1], [0], [0], [1], [0, 0, 1, 1], [], []>} : vector<16x16xf32>, vector<16x256xf32>, vector<16x256xf32> -> vector<16x256xf32>
    %c5_33 = arith.constant 5 : index
    %c0_34 = arith.constant 0 : index
    %c0_35 = arith.constant 0 : index
    %54 = vector.load %arg3[%c5_33, %c0_34, %c0_35] : memref<9x16x1xf32, #tpu.memory_space<vmem>>, vector<1x16x1xf32>
    %55 = vector.shape_cast %54 : vector<1x16x1xf32> to vector<16x1xf32>
    %56 = vector.broadcast %55 : vector<16x1xf32> to vector<16x256xf32>
    %57 = arith.addf %53, %56 : vector<16x256xf32>
    %58 = math.tanh %57 : vector<16x256xf32>
    %c6 = arith.constant 6 : index
    %c0_36 = arith.constant 0 : index
    %c0_37 = arith.constant 0 : index
    %59 = vector.load %arg2[%c6, %c0_36, %c0_37] : memref<9x16x16xf32, #tpu.memory_space<vmem>>, vector<1x16x16xf32>
    %60 = vector.shape_cast %59 : vector<1x16x16xf32> to vector<16x16xf32>
    %cst_38 = arith.constant dense<0.000000e+00> : vector<16x256xf32>
    %61 = tpu.matmul %60, %58, %cst_38 {dimension_numbers = #tpu.dot_dimension_numbers<[1], [0], [0], [1], [0, 0, 1, 1], [], []>} : vector<16x16xf32>, vector<16x256xf32>, vector<16x256xf32> -> vector<16x256xf32>
    %c6_39 = arith.constant 6 : index
    %c0_40 = arith.constant 0 : index
    %c0_41 = arith.constant 0 : index
    %62 = vector.load %arg3[%c6_39, %c0_40, %c0_41] : memref<9x16x1xf32, #tpu.memory_space<vmem>>, vector<1x16x1xf32>
    %63 = vector.shape_cast %62 : vector<1x16x1xf32> to vector<16x1xf32>
    %64 = vector.broadcast %63 : vector<16x1xf32> to vector<16x256xf32>
    %65 = arith.addf %61, %64 : vector<16x256xf32>
    %66 = math.tanh %65 : vector<16x256xf32>
    %c7 = arith.constant 7 : index
    %c0_42 = arith.constant 0 : index
    %c0_43 = arith.constant 0 : index
    %67 = vector.load %arg2[%c7, %c0_42, %c0_43] : memref<9x16x16xf32, #tpu.memory_space<vmem>>, vector<1x16x16xf32>
    %68 = vector.shape_cast %67 : vector<1x16x16xf32> to vector<16x16xf32>
    %cst_44 = arith.constant dense<0.000000e+00> : vector<16x256xf32>
    %69 = tpu.matmul %68, %66, %cst_44 {dimension_numbers = #tpu.dot_dimension_numbers<[1], [0], [0], [1], [0, 0, 1, 1], [], []>} : vector<16x16xf32>, vector<16x256xf32>, vector<16x256xf32> -> vector<16x256xf32>
    %c7_45 = arith.constant 7 : index
    %c0_46 = arith.constant 0 : index
    %c0_47 = arith.constant 0 : index
    %70 = vector.load %arg3[%c7_45, %c0_46, %c0_47] : memref<9x16x1xf32, #tpu.memory_space<vmem>>, vector<1x16x1xf32>
    %71 = vector.shape_cast %70 : vector<1x16x1xf32> to vector<16x1xf32>
    %72 = vector.broadcast %71 : vector<16x1xf32> to vector<16x256xf32>
    %73 = arith.addf %69, %72 : vector<16x256xf32>
    %74 = math.tanh %73 : vector<16x256xf32>
    %c8 = arith.constant 8 : index
    %c0_48 = arith.constant 0 : index
    %c0_49 = arith.constant 0 : index
    %75 = vector.load %arg2[%c8, %c0_48, %c0_49] : memref<9x16x16xf32, #tpu.memory_space<vmem>>, vector<1x16x16xf32>
    %76 = vector.shape_cast %75 : vector<1x16x16xf32> to vector<16x16xf32>
    %cst_50 = arith.constant dense<0.000000e+00> : vector<16x256xf32>
    %77 = tpu.matmul %76, %74, %cst_50 {dimension_numbers = #tpu.dot_dimension_numbers<[1], [0], [0], [1], [0, 0, 1, 1], [], []>} : vector<16x16xf32>, vector<16x256xf32>, vector<16x256xf32> -> vector<16x256xf32>
    %c8_51 = arith.constant 8 : index
    %c0_52 = arith.constant 0 : index
    %c0_53 = arith.constant 0 : index
    %78 = vector.load %arg3[%c8_51, %c0_52, %c0_53] : memref<9x16x1xf32, #tpu.memory_space<vmem>>, vector<1x16x1xf32>
    %79 = vector.shape_cast %78 : vector<1x16x1xf32> to vector<16x1xf32>
    %80 = vector.broadcast %79 : vector<16x1xf32> to vector<16x256xf32>
    %81 = arith.addf %77, %80 : vector<16x256xf32>
    %82 = vector.extract_strided_slice %81 {offsets = [0, 0], sizes = [1, 256], strides = [1, 1]} : vector<16x256xf32> to vector<1x256xf32>
    %c0_54 = arith.constant 0 : index
    %c0_55 = arith.constant 0 : index
    %83 = vector.load %arg4[%c0_54, %c0_55] : memref<1x256xf32, #tpu.memory_space<vmem>>, vector<1x256xf32>
    tpu.vector_store %arg4[%c0_54, %c0_55], %82 {strides = array<i32>} : memref<1x256xf32, #tpu.memory_space<vmem>>, vector<1x256xf32>,
    return
  }
  func.func @transform_0(%arg0: i32) -> (i32, i32) {
    %c0_i32 = arith.constant 0 : i32
    %c0_i32_0 = arith.constant 0 : i32
    return %c0_i32, %arg0 : i32, i32
  }
  func.func @transform_1(%arg0: i32) -> (i32, i32, i32) {
    %c0_i32 = arith.constant 0 : i32
    %c0_i32_0 = arith.constant 0 : i32
    %c0_i32_1 = arith.constant 0 : i32
    %c0_i32_2 = arith.constant 0 : i32
    return %c0_i32, %c0_i32_0, %c0_i32_1 : i32, i32, i32
  }
  func.func @transform_2(%arg0: i32) -> (i32, i32, i32) {
    %c0_i32 = arith.constant 0 : i32
    %c0_i32_0 = arith.constant 0 : i32
    %c0_i32_1 = arith.constant 0 : i32
    %c0_i32_2 = arith.constant 0 : i32
    return %c0_i32, %c0_i32_0, %c0_i32_1 : i32, i32, i32
  }
  func.func @transform_3(%arg0: i32) -> (i32, i32) {
    %c0_i32 = arith.constant 0 : i32
    %c0_i32_0 = arith.constant 0 : i32
    return %c0_i32, %arg0 : i32, i32
  }
}

</mosaic_0001>

<bundles_post_ra>
// kernel: tpu_custom_call.1
= control target key start
LH: loop header
LB: loop body
LE: loop exit
PB: predicated region body
PF: predicated region fallthrough
CT: control target
= control target key end

     0   :  { %v1136_v1 = vmov 1   ;;  %v1137_v2 = vmov 0   ;;  %s1322_s0 = inlined_call_operand.vmem [shape: f32[2,256], index: 0, kind: input, shape index: {}]   ;;  %s1323_s1 = inlined_call_operand.vmem [shape: f32[9,16,16], index: 1, kind: input, shape index: {}]   ;;  %s1324_s2 = inlined_call_operand.vmem [shape: f32[9,16,1], index: 2, kind: input, shape index: {}]   ;;  %s1325_s3 = inlined_call_operand.hbm [shape: f32[1,256], index: 3, kind: output, shape index: {}]  }
   0x1   :  { %v16_v0 = vld [vmem:[%s1323_s1] sm:$0xff]  ;;  %1046 = vset.pattern.permute.xlu1 %v1136_v1  ;;  %1045 = vset.pattern.permute.xlu0 %v1137_v2  ;;  %v17_v3 = vld [vmem:[%s1323_s1 + $0x8] sm:$0xff] }
   0x2   :  { %52 = vperm.xlu1 %1046, %v16_v0   ;;  %20 = vperm.xlu0 %1045, %v16_v0  }
   0x6   :  { %56 = vperm.xlu1 %1046, %v17_v3   ;;  %25 = vperm.xlu0 %1045, %v17_v3  }
   0x7   :  { %8 = vsyncpa [#allocation3], 0  ;;  %v85_v4 = vld [vmem:[%s1324_s2] sm:$0xff]  ;;  %v86_v5 = vld [vmem:[%s1324_s2 + $0x8] sm:$0xff]  ;;  %v1138_v16 = vmov 0.0   ;;  %v29_v22 = vlaneseq  ;;  %vm121_vm0 = vcmask 130048  }
   0x8   :  { %v962_v6 = vld [vmem:[%s1324_s2 + $0x10] sm:$0xff]  ;;  %v963_v7 = vld [vmem:[%s1324_s2 + $0x18] sm:$0xff]  ;;  %v968_v8 = vld [vmem:[%s1324_s2 + $0x20] sm:$0xff]  ;;  %192 = vmatprep.mubr.f32.mxu0 %v1138_v16  ;;  %295 = vmatprep.mubr.f32.mxu1 %v1138_v16  ;;  %s1140_s26 = smov [#allocation2]  }
   0x9   :  { %v969_v9 = vld [vmem:[%s1324_s2 + $0x28] sm:$0xff]  ;;  %v974_v10 = vld [vmem:[%s1324_s2 + $0x30] sm:$0xff]  ;;  %v975_v11 = vld [vmem:[%s1324_s2 + $0x38] sm:$0xff]  ;;  %v1221_v23 = vshrl.u32 %v29_v22, 7  ;;  %s952_s27 = sshll.u32 %s1140_s26, 4  ;;  %vm943_vm1 = vcmp.lt.s32.totalorder %v29_v22, 256  ;;  %s953_s27 = int_to_ptr.vmem [resolvable:$true] %s952_s27 }
   0xa   :  { %1047 = vset.pattern.permute.xlu1 %v1137_v2  ;;  %89 = vperm.xlu0 %1045, %v85_v4   ;;  %v980_v12 = vld [vmem:[%s1324_s2 + $0x40] sm:$0xff]  ;;  %v981_v13 = vld [vmem:[%s1324_s2 + $0x48] sm:$0xff]  ;;  %v986_v14 = vld [vmem:[%s1324_s2 + $0x50] sm:$0xff]  ;;  %p1117_p1 = scmp.lt.s32.totalorder %s953_s27, %s953_s27 }
   0xb   :  { %94 = vperm.xlu1 %1047, %v86_v5   ;;  %v987_v15 = vld [vmem:[%s1324_s2 + $0x58] sm:$0xff]  ;;  %v992_v17 = vld [vmem:[%s1324_s2 + $0x60] sm:$0xff]  ;;  %v993_v18 = vld [vmem:[%s1324_s2 + $0x68] sm:$0xff]  ;;  %v61_v24 = vsub.s32 1, %v1221_v23  ;;  %v65_v25 = vsub.s32 3, %v1221_v23  ;;  %v31_v26 = vsub.s32 0, %v1221_v23 }
   0xc   :  { %v998_v19 = vld [vmem:[%s1324_s2 + $0x70] sm:$0xff]  ;;  %v999_v20 = vld [vmem:[%s1324_s2 + $0x78] sm:$0xff]  ;;  %v1004_v21 = vld [vmem:[%s1324_s2 + $0x80] sm:$0xff]  ;;  %v35_v27 = vsub.s32 2, %v1221_v23 }
   0xd   :  { %v15_v28 = vld [vmem:[%s1322_s0] sm:$0xf]  ;;  %v960_v1 = vld [vmem:[%s1323_s1 + $0x10] sm:$0xff]  ;;  %v961_v2 = vld [vmem:[%s1323_s1 + $0x18] sm:$0xff] }
   0xe   :  { %113 = vperm.xlu0 %1045, %v962_v6   ;;  %v62_v29 = vrot.slane %v15_v28, %v61_v24  ;;  %v66_v30 = vrot.slane %v15_v28, %v65_v25  ;;  %v32_v31 = vrot.slane %v15_v28, %v31_v26  ;;  %v36_v32 = vrot.slane %v15_v28, %v35_v27 }
   0xf   :  { %118 = vperm.xlu1 %1047, %v963_v7  }
  0x10   :  { %v72_v33 = vrot.slane %v62_v29, %v61_v24  ;;  %v76_v34 = vrot.slane %v66_v30, %v61_v24  ;;  %v42_v35 = vrot.slane %v32_v31, %v31_v26  ;;  %v46_v36 = vrot.slane %v36_v32, %v31_v26 }
  0x12   :  { %217 = vperm.xlu0 %1045, %v968_v8  }
  0x13   :  { %222 = vperm.xlu1 %1047, %v969_v9  }
  0x16   :  { %320 = vperm.xlu0 %1045, %v974_v10  }
  0x17   :  { %325 = vperm.xlu1 %1047, %v975_v11  }
  0x1a   :  { %423 = vperm.xlu0 %1045, %v980_v12  }
  0x1b   :  { %428 = vperm.xlu1 %1047, %v981_v13  }
  0x1e   :  { %526 = vperm.xlu0 %1045, %v986_v14  }
  0x1f   :  { %531 = vperm.xlu1 %1047, %v987_v15  }
  0x22   :  { %629 = vperm.xlu0 %1045, %v992_v17  }
  0x23   :  { %634 = vperm.xlu1 %1047, %v993_v18  }
  0x26   :  { %732 = vperm.xlu0 %1045, %v998_v19  }
  0x27   :  { %737 = vperm.xlu1 %1047, %v999_v20   ;;  %v966_v20 = vld [vmem:[%s1323_s1 + $0x20] sm:$0xff] }
  0x2a   :  { %835 = vperm.xlu0 %1045, %v1004_v21   ;;  %v967_v21 = vld [vmem:[%s1323_s1 + $0x28] sm:$0xff] }
  0x81   :  { %v53_v37 = vpop.permute.xlu1 %52  ;;  %v21_v38 = vpop.permute.xlu0 %20 }
  0x82   :  { %v77_v39 = vmul.f32 %v72_v33, %v53_v37  ;;  %v78_v40 = vmul.f32 %v76_v34, %v53_v37  ;;  %v47_v41 = vmul.f32 %v42_v35, %v21_v38  ;;  %v48_v42 = vmul.f32 %v46_v36, %v21_v38 }
  0x84   :  { %v81_v49 = vadd.f32 %v77_v39, %v47_v41  ;;  %v82_v50 = vadd.f32 %v78_v40, %v48_v42  ;;  %v972_v40 = vld [vmem:[%s1323_s1 + $0x30] sm:$0xff]  ;;  %v973_v41 = vld [vmem:[%s1323_s1 + $0x38] sm:$0xff] }
  0x85   :  { %v57_v43 = vpop.permute.xlu1 %56  ;;  %v26_v44 = vpop.permute.xlu0 %25 }
  0x86   :  { %v79_v45 = vmul.f32 %v72_v33, %v57_v43  ;;  %v80_v46 = vmul.f32 %v76_v34, %v57_v43  ;;  %v49_v47 = vmul.f32 %v42_v35, %v26_v44  ;;  %v50_v48 = vmul.f32 %v46_v36, %v26_v44 }
  0x88   :  { %v83_v51 = vadd.f32 %v79_v45, %v49_v47  ;;  %v84_v52 = vadd.f32 %v80_v46, %v50_v48 }
  0x89   :  { %v90_v53 = vpop.permute.xlu0 %89 }
  0x8a   :  { %v97_v54 = vadd.f32 %v90_v53, %v81_v49  ;;  %v98_v55 = vadd.f32 %v90_v53, %v82_v50  ;;  %v95_v56 = vpop.permute.xlu1 %94 }
  0x8b   :  { %v99_v57 = vadd.f32 %v95_v56, %v83_v51  ;;  %v100_v58 = vadd.f32 %v95_v56, %v84_v52 }
  0x8c   :  { %1048 = vtanh.f32 %v97_v54 }
  0x8d   :  { %1050 = vtanh.f32 %v98_v55  ;;  %v114_v3 = vpop.permute.xlu0 %113 }
  0x8e   :  { %1052 = vtanh.f32 %v99_v57  ;;  %v119_v8 = vpop.permute.xlu1 %118 }
  0x8f   :  { %1054 = vtanh.f32 %v100_v58  ;;  %v978_v58 = vld [vmem:[%s1323_s1 + $0x40] sm:$0xff] }
  0x91   :  { %v218_v24 = vpop.permute.xlu0 %217 }
  0x92   :  { %v223_v29 = vpop.permute.xlu1 %222 }
  0x95   :  { %v321_v42 = vpop.permute.xlu0 %320 }
  0x96   :  { %v1049_v59 = vpop.eup %1048  ;;  %v326_v47 = vpop.permute.xlu1 %325 }
  0x97   :  { %v1051_v60 = vpop.eup %1050 }
  0x98   :  { %v1053_v61 = vpop.eup %1052 }
  0x99   :  { %v1055_v62 = vpop.eup %1054  ;;  %v1010_v63 = vpack.c.bf16 %v1053_v61, %v1049_v59  ;;  %v979_v59 = vld [vmem:[%s1323_s1 + $0x48] sm:$0xff] }
  0x9a   :  { %v1008_v0 = vpack.c.bf16 %v1055_v62, %v1051_v60  ;;  %v424_v60 = vpop.permute.xlu0 %423 }
  0x9c   :  { %1009 = vmatprep.subr.bf16.mxu0 %v1008_v0 }
  0x9d   :  { %1011 = vmatpush1.bf16.msra.mxu0 %v1010_v63 }
  0xa0   :  { %964 = vmatmul.mubr.msk.f32.vlgmr.msra.gmra.mrb[0].mxu0 %vm121_vm0, %v960_v1  ;;  %v429_v1 = vpop.permute.xlu1 %428 }
  0xa1   :  { %198 = vmatprep.mubr.f32.mxu0 %v1138_v16 }
  0xa4   :  { %965 = vmatmul.mubr.msk.f32.gmra.mrb[2].mxu0 %vm121_vm0, %v961_v2 }
  0xa5   :  { %398 = vmatprep.mubr.f32.mxu0 %v1138_v16 }
 0x173   :  { %v194_v4 = vpop.f32.mrb[0].mxu0 }
 0x174   :  { %v195_v5 = vadd.f32 %v194_v4, %v114_v3  ;;  %v196_v6 = vpop.f32.mrb[1].mxu0 }
 0x175   :  { %v197_v7 = vadd.f32 %v196_v6, %v114_v3 }
 0x176   :  { %1056 = vtanh.f32 %v195_v5 }
 0x177   :  { %v200_v9 = vpop.f32.mrb[2].mxu0  ;;  %1058 = vtanh.f32 %v197_v7 }
 0x178   :  { %v201_v10 = vadd.f32 %v200_v9, %v119_v8  ;;  %v202_v11 = vpop.f32.mrb[3].mxu0 }
 0x179   :  { %v203_v12 = vadd.f32 %v202_v11, %v119_v8 }
 0x17a   :  { %1060 = vtanh.f32 %v201_v10 }
 0x17b   :  { %1062 = vtanh.f32 %v203_v12  ;;  %v984_v12 = vld [vmem:[%s1323_s1 + $0x50] sm:$0xff] }
 0x180   :  { %v1057_v13 = vpop.eup %1056 }
 0x181   :  { %v1059_v14 = vpop.eup %1058 }
 0x184   :  { %v1061_v15 = vpop.eup %1060 }
 0x185   :  { %v1063_v17 = vpop.eup %1062  ;;  %v1014_v18 = vpack.c.bf16 %v1061_v15, %v1057_v13  ;;  %v985_v13 = vld [vmem:[%s1323_s1 + $0x58] sm:$0xff] }
 0x186   :  { %v1012_v19 = vpack.c.bf16 %v1063_v17, %v1059_v14  ;;  %v527_v14 = vpop.permute.xlu0 %526 }
 0x188   :  { %1013 = vmatprep.subr.bf16.mxu1 %v1012_v19 }
 0x189   :  { %1015 = vmatpush1.bf16.msra.mxu1 %v1014_v18 }
 0x18c   :  { %970 = vmatmul.mubr.msk.f32.vlgmr.msra.gmra.mrb[0].mxu1 %vm121_vm0, %v966_v20  ;;  %v532_v20 = vpop.permute.xlu1 %531 }
 0x18d   :  { %301 = vmatprep.mubr.f32.mxu1 %v1138_v16 }
 0x190   :  { %971 = vmatmul.mubr.msk.f32.gmra.mrb[2].mxu1 %vm121_vm0, %v967_v21 }
 0x191   :  { %501 = vmatprep.mubr.f32.mxu1 %v1138_v16 }
 0x25f   :  { %v297_v25 = vpop.f32.mrb[0].mxu1 }
 0x260   :  { %v298_v26 = vadd.f32 %v297_v25, %v218_v24  ;;  %v299_v27 = vpop.f32.mrb[1].mxu1 }
 0x261   :  { %v300_v28 = vadd.f32 %v299_v27, %v218_v24 }
 0x262   :  { %1064 = vtanh.f32 %v298_v26 }
 0x263   :  { %v303_v30 = vpop.f32.mrb[2].mxu1  ;;  %1066 = vtanh.f32 %v300_v28 }
 0x264   :  { %v304_v31 = vadd.f32 %v303_v30, %v223_v29  ;;  %v305_v32 = vpop.f32.mrb[3].mxu1 }
 0x265   :  { %v306_v33 = vadd.f32 %v305_v32, %v223_v29 }
 0x266   :  { %1068 = vtanh.f32 %v304_v31 }
 0x267   :  { %1070 = vtanh.f32 %v306_v33  ;;  %v990_v33 = vld [vmem:[%s1323_s1 + $0x60] sm:$0xff] }
 0x26c   :  { %v1065_v34 = vpop.eup %1064 }
 0x26d   :  { %v1067_v35 = vpop.eup %1066 }
 0x270   :  { %v1069_v36 = vpop.eup %1068 }
 0x271   :  { %v1071_v37 = vpop.eup %1070  ;;  %v1018_v38 = vpack.c.bf16 %v1069_v36, %v1065_v34  ;;  %v991_v34 = vld [vmem:[%s1323_s1 + $0x68] sm:$0xff] }
 0x272   :  { %v1016_v39 = vpack.c.bf16 %v1071_v37, %v1067_v35  ;;  %v630_v35 = vpop.permute.xlu0 %629 }
 0x274   :  { %1017 = vmatprep.subr.bf16.mxu0 %v1016_v39 }
 0x275   :  { %1019 = vmatpush1.bf16.msra.mxu0 %v1018_v38 }
 0x278   :  { %976 = vmatmul.mubr.msk.f32.vlgmr.msra.gmra.mrb[4].mxu0 %vm121_vm0, %v972_v40  ;;  %v635_v40 = vpop.permute.xlu1 %634 }
 0x279   :  { %404 = vmatprep.mubr.f32.mxu0 %v1138_v16 }
 0x27c   :  { %977 = vmatmul.mubr.msk.f32.gmra.mrb[6].mxu0 %vm121_vm0, %v973_v41 }
 0x27d   :  { %604 = vmatprep.mubr.f32.mxu0 %v1138_v16 }
 0x34b   :  { %v400_v43 = vpop.f32.mrb[4].mxu0 }
 0x34c   :  { %v401_v44 = vadd.f32 %v400_v43, %v321_v42  ;;  %v402_v45 = vpop.f32.mrb[5].mxu0 }
 0x34d   :  { %v403_v46 = vadd.f32 %v402_v45, %v321_v42 }
 0x34e   :  { %1072 = vtanh.f32 %v401_v44 }
 0x34f   :  { %v406_v48 = vpop.f32.mrb[6].mxu0  ;;  %1074 = vtanh.f32 %v403_v46 }
 0x350   :  { %v407_v49 = vadd.f32 %v406_v48, %v326_v47  ;;  %v408_v50 = vpop.f32.mrb[7].mxu0 }
 0x351   :  { %v409_v51 = vadd.f32 %v408_v50, %v326_v47 }
 0x352   :  { %1076 = vtanh.f32 %v407_v49 }
 0x353   :  { %1078 = vtanh.f32 %v409_v51  ;;  %v996_v51 = vld [vmem:[%s1323_s1 + $0x70] sm:$0xff] }
 0x358   :  { %v1073_v52 = vpop.eup %1072 }
 0x359   :  { %v1075_v53 = vpop.eup %1074 }
 0x35c   :  { %v1077_v54 = vpop.eup %1076 }
 0x35d   :  { %v1079_v55 = vpop.eup %1078  ;;  %v1022_v56 = vpack.c.bf16 %v1077_v54, %v1073_v52  ;;  %v997_v52 = vld [vmem:[%s1323_s1 + $0x78] sm:$0xff] }
 0x35e   :  { %v1020_v57 = vpack.c.bf16 %v1079_v55, %v1075_v53  ;;  %v733_v53 = vpop.permute.xlu0 %732 }
 0x360   :  { %1021 = vmatprep.subr.bf16.mxu1 %v1020_v57 }
 0x361   :  { %1023 = vmatpush1.bf16.msra.mxu1 %v1022_v56 }
 0x364   :  { %982 = vmatmul.mubr.msk.f32.vlgmr.msra.gmra.mrb[4].mxu1 %vm121_vm0, %v978_v58  ;;  %v738_v58 = vpop.permute.xlu1 %737 }
 0x365   :  { %507 = vmatprep.mubr.f32.mxu1 %v1138_v16 }
 0x368   :  { %983 = vmatmul.mubr.msk.f32.gmra.mrb[6].mxu1 %vm121_vm0, %v979_v59 }
 0x369   :  { %707 = vmatprep.mubr.f32.mxu1 %v1138_v16 }
 0x437   :  { %v503_v61 = vpop.f32.mrb[4].mxu1 }
 0x438   :  { %v504_v62 = vadd.f32 %v503_v61, %v424_v60  ;;  %v505_v63 = vpop.f32.mrb[5].mxu1 }
 0x439   :  { %v506_v0 = vadd.f32 %v505_v63, %v424_v60 }
 0x43a   :  { %1080 = vtanh.f32 %v504_v62 }
 0x43b   :  { %v509_v2 = vpop.f32.mrb[6].mxu1  ;;  %1082 = vtanh.f32 %v506_v0 }
 0x43c   :  { %v510_v3 = vadd.f32 %v509_v2, %v429_v1  ;;  %v511_v4 = vpop.f32.mrb[7].mxu1 }
 0x43d   :  { %v512_v5 = vadd.f32 %v511_v4, %v429_v1 }
 0x43e   :  { %1084 = vtanh.f32 %v510_v3 }
 0x43f   :  { %1086 = vtanh.f32 %v512_v5  ;;  %v1002_v5 = vld [vmem:[%s1323_s1 + $0x80] sm:$0xff] }
 0x444   :  { %v1081_v6 = vpop.eup %1080 }
 0x445   :  { %v1083_v7 = vpop.eup %1082 }
 0x448   :  { %v1085_v8 = vpop.eup %1084 }
 0x449   :  { %v1087_v9 = vpop.eup %1086  ;;  %v1026_v10 = vpack.c.bf16 %v1085_v8, %v1081_v6  ;;  %v1003_v6 = vld [vmem:[%s1323_s1 + $0x88] sm:$0xff]  ;;  %s1112_s1 = scalar_lea.vmem %s953_s27, 32 }
 0x44a   :  { %v1024_v11 = vpack.c.bf16 %v1087_v9, %v1083_v7  ;;  %v1139_v7 = vmov 1966171168   ;;  %p1113_p0 = scmp.ne.s32.totalorder %s953_s27, %s1112_s1  ;;  %p1118_p2 = scmp.lt.s32.totalorder %s1112_s1, %s1112_s1 }
 0x44b   :  { %v927_v8 = vunpack.c.l.s4 %v1139_v7 }
 0x44c   :  { %1025 = vmatprep.subr.bf16.mxu0 %v1024_v11  ;;  %p1119_p3 = por %p1118_p2, %p1117_p1 }
 0x44d   :  { %1027 = vmatpush1.bf16.msra.mxu0 %v1026_v10  ;;  %v928_v9 = vunpack.c.0.s8 %v927_v8  ;;  %v836_v10 = vpop.permute.xlu0 %835 }
 0x44e   :  { %p1120_p4 = pnand %p1119_p3, %p1113_p0 }
 0x450   :  { %988 = vmatmul.mubr.msk.f32.vlgmr.msra.gmra.mrb[8].mxu0 %vm121_vm0, %v984_v12 }
 0x451   :  { %610 = vmatprep.mubr.f32.mxu0 %v1138_v16 }
 0x454   :  { %989 = vmatmul.mubr.msk.f32.gmra.mrb[10].mxu0 %vm121_vm0, %v985_v13 }
 0x455   :  { %810 = vmatprep.mubr.f32.mxu0 %v1138_v16 }
 0x523   :  { %v606_v15 = vpop.f32.mrb[8].mxu0 }
 0x524   :  { %v607_v17 = vadd.f32 %v606_v15, %v527_v14  ;;  %v608_v18 = vpop.f32.mrb[9].mxu0  ;;  %v931_v15 = vsub.s32 %v928_v9, %v1221_v23 }
 0x525   :  { %v609_v19 = vadd.f32 %v608_v18, %v527_v14 }
 0x526   :  { %1088 = vtanh.f32 %v607_v17 }
 0x527   :  { %v612_v21 = vpop.f32.mrb[10].mxu0  ;;  %1090 = vtanh.f32 %v609_v19 }
 0x528   :  { %v613_v24 = vadd.f32 %v612_v21, %v532_v20  ;;  %v614_v25 = vpop.f32.mrb[11].mxu0 }
 0x529   :  { %v615_v26 = vadd.f32 %v614_v25, %v532_v20 }
 0x52a   :  { %1092 = vtanh.f32 %v613_v24 }
 0x52b   :  { %1094 = vtanh.f32 %v615_v26 }
 0x530   :  { %v1089_v27 = vpop.eup %1088 }
 0x531   :  { %v1091_v28 = vpop.eup %1090 }
 0x534   :  { %v1093_v29 = vpop.eup %1092 }
 0x535   :  { %v1095_v30 = vpop.eup %1094  ;;  %v1030_v31 = vpack.c.bf16 %v1093_v29, %v1089_v27 }
 0x536   :  { %v1028_v32 = vpack.c.bf16 %v1095_v30, %v1091_v28 }
 0x538   :  { %1029 = vmatprep.subr.bf16.mxu1 %v1028_v32 }
 0x539   :  { %1031 = vmatpush1.bf16.msra.mxu1 %v1030_v31 }
 0x53c   :  { %994 = vmatmul.mubr.msk.f32.vlgmr.msra.gmra.mrb[8].mxu1 %vm121_vm0, %v990_v33 }
 0x53d   :  { %713 = vmatprep.mubr.f32.mxu1 %v1138_v16 }
 0x540   :  { %995 = vmatmul.mubr.msk.f32.gmra.mrb[10].mxu1 %vm121_vm0, %v991_v34 }
 0x541   :  { %912 = vmatprep.mubr.f32.mxu1 %v1138_v16 }
 0x60f   :  { %v709_v36 = vpop.f32.mrb[8].mxu1 }
 0x610   :  { %v710_v37 = vadd.f32 %v709_v36, %v630_v35  ;;  %v711_v38 = vpop.f32.mrb[9].mxu1 }
 0x611   :  { %v712_v39 = vadd.f32 %v711_v38, %v630_v35 }
 0x612   :  { %1096 = vtanh.f32 %v710_v37 }
 0x613   :  { %v715_v41 = vpop.f32.mrb[10].mxu1  ;;  %1098 = vtanh.f32 %v712_v39 }
 0x614   :  { %v716_v42 = vadd.f32 %v715_v41, %v635_v40  ;;  %v717_v43 = vpop.f32.mrb[11].mxu1 }
 0x615   :  { %v718_v44 = vadd.f32 %v717_v43, %v635_v40 }
 0x616   :  { %1100 = vtanh.f32 %v716_v42 }
 0x617   :  { %1102 = vtanh.f32 %v718_v44 }
 0x61c   :  { %v1097_v45 = vpop.eup %1096 }
 0x61d   :  { %v1099_v46 = vpop.eup %1098 }
 0x620   :  { %v1101_v47 = vpop.eup %1100 }
 0x621   :  { %v1103_v48 = vpop.eup %1102  ;;  %v1034_v49 = vpack.c.bf16 %v1101_v47, %v1097_v45 }
 0x622   :  { %v1032_v50 = vpack.c.bf16 %v1103_v48, %v1099_v46 }
 0x624   :  { %1033 = vmatprep.subr.bf16.mxu0 %v1032_v50 }
 0x625   :  { %1035 = vmatpush1.bf16.msra.mxu0 %v1034_v49 }
 0x628   :  { %1000 = vmatmul.mubr.msk.f32.vlgmr.msra.gmra.mrb[12].mxu0 %vm121_vm0, %v996_v51 }
 0x629   :  { %816 = vmatprep.mubr.f32.mxu0 %v1138_v16 }
 0x62c   :  { %1001 = vmatmul.mubr.msk.f32.gmra.mrb[14].mxu0 %vm121_vm0, %v997_v52 }
 0x6fb   :  { %v812_v54 = vpop.f32.mrb[12].mxu0 }
 0x6fc   :  { %v813_v55 = vadd.f32 %v812_v54, %v733_v53  ;;  %v814_v56 = vpop.f32.mrb[13].mxu0 }
 0x6fd   :  { %v815_v57 = vadd.f32 %v814_v56, %v733_v53 }
 0x6fe   :  { %1104 = vtanh.f32 %v813_v55 }
 0x6ff   :  { %v818_v59 = vpop.f32.mrb[14].mxu0  ;;  %1106 = vtanh.f32 %v815_v57 }
 0x700   :  { %v819_v60 = vadd.f32 %v818_v59, %v738_v58  ;;  %v820_v61 = vpop.f32.mrb[15].mxu0 }
 0x701   :  { %v821_v62 = vadd.f32 %v820_v61, %v738_v58 }
 0x702   :  { %1108 = vtanh.f32 %v819_v60 }
 0x703   :  { %1110 = vtanh.f32 %v821_v62 }
 0x708   :  { %v1105_v63 = vpop.eup %1104 }
 0x709   :  { %v1107_v0 = vpop.eup %1106 }
 0x70c   :  { %v1109_v1 = vpop.eup %1108 }
 0x70d   :  { %v1111_v2 = vpop.eup %1110  ;;  %v1038_v3 = vpack.c.bf16 %v1109_v1, %v1105_v63 }
 0x70e   :  { %v1036_v4 = vpack.c.bf16 %v1111_v2, %v1107_v0 }
 0x710   :  { %1037 = vmatprep.subr.bf16.mxu1 %v1036_v4 }
 0x711   :  { %1039 = vmatpush1.bf16.msra.mxu1 %v1038_v3 }
 0x714   :  { %1006 = vmatmul.mubr.msk.f32.vlgmr.msra.gmra.mrb[12].mxu1 %vm121_vm0, %v1002_v5 }
 0x715   :  { %918 = vmatprep.mubr.f32.mxu1 %v1138_v16 }
 0x718   :  { %1007 = vmatmul.mubr.msk.f32.gmra.mrb[14].mxu1 %vm121_vm0, %v1003_v6 }
 0x7e7   :  { %v914_v11 = vpop.f32.mrb[12].mxu1 }
 0x7e8   :  { %v915_v12 = vadd.f32 %v914_v11, %v836_v10  ;;  %v916_v13 = vpop.f32.mrb[13].mxu1 }
 0x7e9   :  { %v917_v14 = vadd.f32 %v916_v13, %v836_v10 }
 0x7eb   :  { %v925_v17 = vcombine.low %v915_v12, %v917_v14  ;;  %v920_v18 = vpop.f32.mrb[14].mxu1 }
 0x7ec   :  { %v921_v19 = vpop.f32.mrb[15].mxu1 }
 0x7ed   :  { %v932_v16 = vrot.slane %v925_v17, %v931_v15 }
 0x7ef   :  { %v939_v20 = vrot.slane %v932_v16, %v931_v15 }
 0x7f1   :  { %945 = vst.msk [vmem:[#allocation2] sm:$0x3] %vm943_vm1, %v939_v20 }
 0x7f2   :  { %1123 = shalt.err (!%p1120_p4)
}
 0x7f3   :  { %s1124_s30 = scalar_lea.hbm %s1325_s3, 32 }
 0x7f4   :  { %p1125_p5 = scmp.ne.s32.totalorder %s1325_s3, %s1124_s30  ;;  %p1128_p6 = scmp.lt.u32.totalorder %s1124_s30, %s1325_s3 }
 0x7f6   :  { %p1130_p7 = pnand %p1128_p6, %p1125_p5 }
 0x7f8   :  { %1133 = shalt.err (!%p1130_p7)
}
 0x7f9   :  { %955 = dma.vmem_to_hbm [thread:$0]  %s953_s27, 32, %s1325_s3, [#allocation3]  }
 0x7fa   :  { %1134 = dma.done.wait [#allocation3], 32  }
 0x7fb   :  { %1135 = vsyncadd [#allocation3], 4294967264 }
 0x7fc   :  { %959 = vsyncpa [#allocation3], 1 }

</bundles_post_ra>
